<compile_context>
chip_gen: v7x
topology: tpu7x:2x2x1
jax: 0.10.0
libtpu: 0.0.40
codegen_flags: <defaults>
</compile_context>

<pallas_src>
import functools
import math

import jax
import jax.numpy as jnp
from jax.experimental import pallas as pl
from jax.experimental.pallas import tpu as pltpu


# ---------------------------------------------------------------------------
# budgets (bandwidth-bound streaming add: tile size is the only real lever)
# ---------------------------------------------------------------------------
_SMALL_FALLBACK_BYTES = 1 << 20   # below this a fused XLA add beats any kernel launch
_MIN_SPLIT_BYTES = 2 << 20        # split the S axis >=2 ways above this (v7x 2-TC balance)
_MAX_TILE_BYTES = 8 << 20         # per-x-tile cap (review: 4-8 MiB tiles)


@functools.lru_cache(maxsize=1)
def _vmem_budgets():
    """(vmem_limit_bytes, per-x-tile byte budget), generation-aware.

    v7x has 64 MiB physical VMEM; v5e/v6e have 128 MiB. Live footprint is
    ~4x tile (x + out, double-buffered) plus a small pe tile, so keep the
    limit at ~75% of physical and the tile at <= limit/6 (headroom so the
    compiler never has to drop buffering).
    """
    cap = 64 * 1024 * 1024  # conservative default = v7x
    try:
        info = pltpu.get_tpu_info()
        cap = int(getattr(info, "vmem_capacity_bytes", cap) or cap)
    except Exception:
        pass
    limit = min((cap * 3) // 4, 96 * 1024 * 1024)
    tile_budget = min(_MAX_TILE_BYTES, limit // 6)
    return limit, tile_budget


def _sublane_unit(dtype) -> int:
    # rows per packed vreg sublane: 8 for f32, 16 for bf16, 32 for int8/fp8
    return max(8, 32 // jnp.dtype(dtype).itemsize)


def _num_row_steps(rows: int, rows_cap: int, row_bytes: int) -> int:
    """Balanced number of S-axis grid steps (even when >1, for v7x's 2 TCs)."""
    if rows <= rows_cap:
        # Fits in one block; still split 2-ways on big tiles so the second
        # TensorCore on v7x gets work (the axis is marked "parallel").
        return 2 if (rows >= 16 and rows * row_bytes >= _MIN_SPLIT_BYTES) else 1
    n = pl.cdiv(rows, rows_cap)
    return n + 1 if n % 2 else n


# ---------------------------------------------------------------------------
# kernels
# ---------------------------------------------------------------------------
def _add3d_kernel(x_ref, pe_ref, o_ref):
    # pe tile (tS, 1, D) broadcasts over the batch axis of the (tS, tB, D) x tile.
    o_ref[...] = x_ref[...] + pe_ref[...]


def _add2d_kernel(x_ref, pe_ref, o_ref, *, batch):
    # x tile (tS, B*D); pe tile (tS, D). Lane-replicate pe in VMEM (hidden
    # under the DMAs) so HBM only streams S*D of pe, never S*B*D.
    pe_t = pe_ref[...]
    if batch > 1:
        pe_t = jnp.concatenate([pe_t] * batch, axis=-1)
    o_ref[...] = x_ref[...] + pe_t


# ---------------------------------------------------------------------------
# module
# ---------------------------------------------------------------------------
class PositionalEncoding:
    """Pallas-TPU port of net/transformer.py::PositionalEncoding.

    forward(x): x + pe[:x.shape[0]] with x of shape (seq_len, batch, d_model).
    The PyTorch module takes a `dropout` arg but never applies it in forward,
    so there is nothing to port there.
    """

    def __init__(self, d_model: int, dropout: float = 0.1, max_len: int = 512,
                 dtype=jnp.float32):
        del dropout  # unused by the reference forward pass
        position = jnp.arange(0, max_len, dtype=jnp.float32)[:, None]      # (max_len, 1)
        div_term = jnp.exp(
            jnp.arange(0, d_model, 2, dtype=jnp.float32)
            * (-math.log(10000.0) / d_model))                              # (d_model/2,)
        ang = position * div_term                                          # (max_len, d_model/2)
        pe = jnp.zeros((max_len, d_model), jnp.float32)
        pe = pe.at[:, 0::2].set(jnp.sin(ang))
        pe = pe.at[:, 1::2].set(jnp.cos(ang))
        # Cast + lay out once at init (no per-forward astype / re-materialization).
        self.pe2d = pe.astype(dtype)                  # (max_len, d_model)   lane view
        self.pe = self.pe2d[:, None, :]               # (max_len, 1, d_model) torch-buffer layout
        self.d_model = d_model
        self.max_len = max_len
        self.dtype = dtype

    # -- public forward -----------------------------------------------------
    def __call__(self, x: jnp.ndarray, *, force_kernel: bool = False) -> jnp.ndarray:
        S, B, D = x.shape
        assert D == self.d_model, "d_model mismatch"
        assert S <= self.max_len, "sequence longer than positional-encoding buffer"
        itemsize = jnp.dtype(x.dtype).itemsize
        pe3 = self.pe if self.pe.dtype == x.dtype else self.pe.astype(x.dtype)
        pe2 = self.pe2d if self.pe2d.dtype == x.dtype else self.pe2d.astype(x.dtype)

        # Tiny tensors: kernel launch + grid overhead dominates; fused XLA add wins.
        if not force_kernel and x.size * itemsize < _SMALL_FALLBACK_BYTES:
            return x + pe3[:S]

        vmem_limit, tile_budget = _vmem_budgets()
        if D >= 128:
            return self._forward_3d(x, pe3, S, B, D, itemsize, vmem_limit, tile_budget)
        return self._forward_lane_dense(x, pe2, S, B, D, itemsize, vmem_limit, tile_budget)

    # -- D >= 128: blocks are already lane-dense ------------------------------
    def _forward_3d(self, x, pe3, S, B, D, itemsize, vmem_limit, tile_budget):
        sub = _sublane_unit(x.dtype)
        # Prefer full-batch tiles: contiguous in HBM (single-descriptor DMA) and
        # the pe tile is reused across the whole batch within one grid step.
        if B <= sub or B * D * itemsize * 8 <= tile_budget:
            tB = B
        else:
            cap = max(sub, (tile_budget // (8 * D * itemsize)) // sub * sub)
            tB = min(B, cap)                               # multiple of the sublane unit
        row_bytes = tB * D * itemsize
        rows_cap = max(1, tile_budget // row_bytes)
        n_steps = _num_row_steps(S, rows_cap, row_bytes)
        tS = pl.cdiv(S, n_steps)                           # balanced; leading dim needs no alignment
        grid = (pl.cdiv(S, tS), pl.cdiv(B, tB))
        return pl.pallas_call(
            _add3d_kernel,
            out_shape=jax.ShapeDtypeStruct((S, B, D), x.dtype),
            grid_spec=pl.GridSpec(
                grid=grid,
                in_specs=[
                    pl.BlockSpec((tS, tB, D), lambda i, j: (i, j, 0)),
                    # Full (max_len, 1, D) pe buffer; index_map selects rows.
                    pl.BlockSpec((tS, 1, D), lambda i, j: (i, 0, 0)),
                ],
                out_specs=pl.BlockSpec((tS, tB, D), lambda i, j: (i, j, 0)),
            ),
            compiler_params=pltpu.CompilerParams(
                dimension_semantics=("parallel", "parallel"),
                vmem_limit_bytes=vmem_limit,
            ),
        )(x, pe3)

    # -- D < 128: view x as (S, B*D) so output stores are lane-dense ---------
    def _forward_lane_dense(self, x, pe2, S, B, D, itemsize, vmem_limit, tile_budget):
        W = B * D
        x2 = x.reshape(S, W)
        pe2s = pe2[:S]                                     # (S, D): tiny; full-S blocks stay legal
        row_bytes = W * itemsize
        rows_cap = max(8, tile_budget // row_bytes)
        n_steps = _num_row_steps(S, rows_cap, row_bytes)
        tS = pl.cdiv(S, n_steps)
        if tS < S:
            tS = min(S, ((tS + 7) // 8) * 8)               # sublane dim here: multiple of 8 (or full S)
        grid = (pl.cdiv(S, tS),)
        out2 = pl.pallas_call(
            functools.partial(_add2d_kernel, batch=B),
            out_shape=jax.ShapeDtypeStruct((S, W), x.dtype),
            grid_spec=pl.GridSpec(
                grid=grid,
                in_specs=[
                    pl.BlockSpec((tS, W), lambda i: (i, 0)),
                    pl.BlockSpec((tS, D), lambda i: (i, 0)),   # pe stays S*D in HBM
                ],
                out_specs=pl.BlockSpec((tS, W), lambda i: (i, 0)),
            ),
            compiler_params=pltpu.CompilerParams(
                dimension_semantics=("parallel",),
                vmem_limit_bytes=vmem_limit,
            ),
        )(x2, pe2s)
        return out2.reshape(S, B, D)


if __name__ == "__main__":
    key = jax.random.PRNGKey(0)
    k1, k2 = jax.random.split(key)

    # Case 1: small seq-first shape (S=8, B=2, d_model=32) -> lane-dense D<128 path.
    d_model = 32
    S, B = 8, 2
    enc_small = PositionalEncoding(d_model)
    x_small = jax.random.normal(k1, (S, B, d_model), dtype=jnp.float32)
    out_small = jax.block_until_ready(enc_small(x_small, force_kernel=True))
    ref_small = x_small + enc_small.pe[:S]
    assert out_small.shape == (S, B, d_model)
    assert jnp.allclose(out_small, ref_small, atol=1e-6), "mismatch (lane-dense path)"

    # Also exercise the tiny-tensor XLA fallback dispatch.
    out_fb = jax.block_until_ready(enc_small(x_small))
    assert jnp.allclose(out_fb, ref_small, atol=1e-6), "mismatch (fallback path)"

    # Case 2: transformer-like shape -> tiled 3D path (balanced multi-step grid).
    d_model2 = 256
    S2, B2 = 384, 8
    enc_big = PositionalEncoding(d_model2)
    x_big = jax.random.normal(k2, (S2, B2, d_model2), dtype=jnp.float32)
    out_big = jax.block_until_ready(enc_big(x_big))
    ref_big = x_big + enc_big.pe[:S2]
    assert out_big.shape == (S2, B2, d_model2)
    assert jnp.allclose(out_big, ref_big, atol=1e-6), "mismatch (3D path)"

    print("KERNEL_OK")
</pallas_src>

<mosaic_0001>
module attributes {stable_mosaic.version = 11 : i64} {
  func.func @_add2d_kernel(%arg0: i32, %arg1: memref<8x64xf32, #tpu.memory_space<vmem>>, %arg2: memref<8x32xf32, #tpu.memory_space<vmem>>, %arg3: memref<8x64xf32, #tpu.memory_space<vmem>>) attributes {dimension_semantics = [#tpu.dimension_semantics<parallel>], iteration_bounds = array<i64: 1>, scalar_prefetch = 0 : i64, scratch_operands = 0 : i64, tpu.core_type = #tpu.core_type<tc>, window_params = [{transform_indices = @transform_0, window_bounds = array<i64: 8, 64>}, {transform_indices = @transform_1, window_bounds = array<i64: 8, 32>}, {transform_indices = @transform_2, window_bounds = array<i64: 8, 64>}]} {
    %c0 = arith.constant 0 : index
    %c0_0 = arith.constant 0 : index
    %0 = vector.load %arg2[%c0, %c0_0] : memref<8x32xf32, #tpu.memory_space<vmem>>, vector<8x32xf32>
    %1 = tpu.concatenate %0, %0 in 1 : vector<8x32xf32>, vector<8x32xf32> -> vector<8x64xf32>
    %c0_1 = arith.constant 0 : index
    %c0_2 = arith.constant 0 : index
    %2 = vector.load %arg1[%c0_1, %c0_2] : memref<8x64xf32, #tpu.memory_space<vmem>>, vector<8x64xf32>
    %3 = arith.addf %2, %1 : vector<8x64xf32>
    %c0_3 = arith.constant 0 : index
    %c0_4 = arith.constant 0 : index
    %4 = vector.load %arg3[%c0_3, %c0_4] : memref<8x64xf32, #tpu.memory_space<vmem>>, vector<8x64xf32>
    tpu.vector_store %arg3[%c0_3, %c0_4], %3 {strides = array<i32>} : memref<8x64xf32, #tpu.memory_space<vmem>>, vector<8x64xf32>,
    return
  }
  func.func @transform_0(%arg0: i32) -> (i32, i32) {
    %c0_i32 = arith.constant 0 : i32
    %c0_i32_0 = arith.constant 0 : i32
    return %arg0, %c0_i32 : i32, i32
  }
  func.func @transform_1(%arg0: i32) -> (i32, i32) {
    %c0_i32 = arith.constant 0 : i32
    %c0_i32_0 = arith.constant 0 : i32
    return %arg0, %c0_i32 : i32, i32
  }
  func.func @transform_2(%arg0: i32) -> (i32, i32) {
    %c0_i32 = arith.constant 0 : i32
    %c0_i32_0 = arith.constant 0 : i32
    return %arg0, %c0_i32 : i32, i32
  }
}

</mosaic_0001>

<bundles_post_ra>
// kernel: tpu_custom_call.1
= control target key start
LH: loop header
LB: loop body
LE: loop exit
PB: predicated region body
PF: predicated region fallthrough
CT: control target
= control target key end

     0   :  { %7 = vsyncpa [#allocation3], 0  ;;  %s194_s0 = inlined_call_operand.hbm [shape: f32[8,64], index: 0, kind: input, shape index: {}]   ;;  %s195_s1 = inlined_call_operand.hbm [shape: f32[8,32], index: 1, kind: input, shape index: {}]   ;;  %s196_s2 = inlined_call_operand.hbm [shape: f32[8,64], index: 2, kind: output, shape index: {}]  }
   0x1   :  { %8 = vsyncpa [#allocation6], 0 }
   0x2   :  { %9 = vsyncpa [#allocation4], 0  ;;  %s139_s9 = smov [#allocation2]   ;;  %s140_s11 = smov [#allocation5]  }
   0x3   :  { %s16_s10 = sshll.u32 %s139_s9, 4  ;;  %s26_s12 = sshll.u32 %s140_s11, 4  ;;  %s17_s10 = int_to_ptr.vmem [resolvable:$true] %s16_s10  ;;  %s27_s12 = int_to_ptr.vmem [resolvable:$true] %s26_s12 }
   0x4   :  { %s67_s15 = scalar_lea.hbm %s194_s0, 128 }
   0x5   :  { %p68_p0 = scmp.ne.s32.totalorder %s194_s0, %s67_s15  ;;  %p71_p1 = scmp.lt.u32.totalorder %s67_s15, %s194_s0 }
   0x7   :  { %p73_p2 = pnand %p71_p1, %p68_p0 }
   0x9   :  { %76 = shalt.err (!%p73_p2)
}
   0xa   :  { %s77_s20 = scalar_lea.vmem %s17_s10, 128  ;;  %p82_p4 = scmp.lt.s32.totalorder %s17_s10, %s17_s10 }
   0xb   :  { %p78_p3 = scmp.ne.s32.totalorder %s17_s10, %s77_s20  ;;  %p83_p5 = scmp.lt.s32.totalorder %s77_s20, %s77_s20 }
   0xd   :  { %p84_p6 = por %p83_p5, %p82_p4 }
   0xf   :  { %p85_p7 = pnand %p84_p6, %p78_p3 }
  0x11   :  { %88 = shalt.err (!%p85_p7)
}
  0x12   :  { %19 = dma.hbm_to_vmem [thread:$0]  %s194_s0, 128, %s17_s10, [#allocation3]  }
  0x13   :  { %s89_s25 = scalar_lea.hbm %s195_s1, 128 }
  0x14   :  { %p90_p8 = scmp.ne.s32.totalorder %s195_s1, %s89_s25  ;;  %p93_p9 = scmp.lt.u32.totalorder %s89_s25, %s195_s1 }
  0x16   :  { %p95_p10 = pnand %p93_p9, %p90_p8 }
  0x18   :  { %98 = shalt.err (!%p95_p10)
}
  0x19   :  { %s99_s30 = scalar_lea.vmem %s27_s12, 128  ;;  %p104_p12 = scmp.lt.s32.totalorder %s27_s12, %s27_s12 }
  0x1a   :  { %p100_p11 = scmp.ne.s32.totalorder %s27_s12, %s99_s30  ;;  %p105_p13 = scmp.lt.s32.totalorder %s99_s30, %s99_s30 }
  0x1c   :  { %p106_p0 = por %p105_p13, %p104_p12 }
  0x1e   :  { %p107_p1 = pnand %p106_p0, %p100_p11 }
  0x20   :  { %110 = shalt.err (!%p107_p1)
}
  0x21   :  { %29 = dma.hbm_to_vmem [thread:$0]  %s195_s1, 128, %s27_s12, [#allocation6]  }
  0x22   :  { %133 = dma.done.wait [#allocation3], 128  }
  0x23   :  { %134 = vsyncadd [#allocation3], 4294967168 }
  0x24   :  { %135 = dma.done.wait [#allocation6], 128  }
  0x25   :  { %136 = vsyncadd [#allocation6], 4294967168  ;;  %v36_v0 = vld [vmem:[#allocation5] sm:$0xff]  ;;  %s141_s4 = smov 32   ;;  %vm41_vm0 = vcmask 261120   ;;  %v43_v1 = vld [vmem:[#allocation2] sm:$0xff] }
  0x26   :  { %38 = vrot.lane.b32.xlu0 %v36_v0, %s141_s4  ;;  %s142_s5 = smov [#allocation7]   ;;  %vm45_vm1 = vcmask 523264  }
  0x27   :  { %s53_s6 = sshll.u32 %s142_s5, 4  ;;  %s54_s6 = int_to_ptr.vmem [resolvable:$true] %s53_s6 }
  0x28   :  { %s111_s7 = scalar_lea.vmem %s54_s6, 128  ;;  %p116_p3 = scmp.lt.s32.totalorder %s54_s6, %s54_s6 }
  0x29   :  { %p112_p2 = scmp.ne.s32.totalorder %s54_s6, %s111_s7  ;;  %p117_p4 = scmp.lt.s32.totalorder %s111_s7, %s111_s7 }
  0x2b   :  { %p118_p5 = por %p117_p4, %p116_p3 }
  0x2d   :  { %p119_p6 = pnand %p118_p5, %p112_p2 }
  0x98   :  { %v39_v2 = vpop.permute.xlu0 %38 }
  0x99   :  { %v42_v3 = vsel %vm41_vm0, %v36_v0, %v39_v2 }
  0x9a   :  { %v44_v4 = vadd.f32 %v43_v1, %v42_v3 }
  0x9c   :  { %46 = vst.msk [vmem:[#allocation7] sm:$0xff] %vm45_vm1, %v44_v4 }
  0x9d   :  { %122 = shalt.err (!%p119_p6)
}
  0x9e   :  { %s123_s9 = scalar_lea.hbm %s196_s2, 128 }
  0x9f   :  { %p124_p7 = scmp.ne.s32.totalorder %s196_s2, %s123_s9  ;;  %p127_p8 = scmp.lt.u32.totalorder %s123_s9, %s196_s2 }
  0xa1   :  { %p129_p9 = pnand %p127_p8, %p124_p7 }
  0xa3   :  { %132 = shalt.err (!%p129_p9)
}
  0xa4   :  { %56 = dma.vmem_to_hbm [thread:$0]  %s54_s6, 128, %s196_s2, [#allocation4]  }
  0xa5   :  { %137 = dma.done.wait [#allocation4], 128  }
  0xa6   :  { %138 = vsyncadd [#allocation4], 4294967168 }
  0xa7   :  { %60 = vsyncpa [#allocation3], 1 }
  0xa8   :  { %61 = vsyncpa [#allocation6], 1 }
  0xa9   :  { %62 = vsyncpa [#allocation4], 1 }

</bundles_post_ra>
